<compile_context>
chip_gen: v6e
topology: v6e:2x2x1
jax: 0.10.0
libtpu: 0.0.40
codegen_flags: <defaults>
</compile_context>

<pallas_src>
import jax
import jax.numpy as jnp
from jax.experimental import pallas as pl
from jax.experimental.pallas import tpu as pltpu


def _round_up(x, m):
    return ((x + m - 1) // m) * m


def _contract(w, x):
    """(R, Cin) @ (Cin, T) -> (R, T) in f32.

    For tiny Cin the MXU tile would be >97% padding, so use unrolled
    broadcast-FMA on the (otherwise idle) VPU instead.
    """
    cin = w.shape[1]
    if cin <= 8:
        acc = w[:, 0:1].astype(jnp.float32) * x[0:1, :].astype(jnp.float32)
        for i in range(1, cin):
            acc = acc + w[:, i:i + 1].astype(jnp.float32) * x[i:i + 1, :].astype(jnp.float32)
        return acc
    return jnp.dot(w.astype(jnp.float32), x.astype(jnp.float32),
                   preferred_element_type=jnp.float32)


# ---------------- Pallas kernels ----------------

def _conv_stats_kernel(x_ref, w_ref, sum_ref, ssq_ref):
    # x_ref: (1, Cin, T), w_ref: (4*Cout, Cin)
    # sum_ref / ssq_ref: (1, 4*Cout, 1), resident across the spatial-tile axis.
    j = pl.program_id(1)

    @pl.when(j == 0)
    def _init():
        sum_ref[...] = jnp.zeros_like(sum_ref)
        ssq_ref[...] = jnp.zeros_like(ssq_ref)

    y = _contract(w_ref[...], x_ref[0])                      # (4*Cout, T) f32
    sum_ref[0] += jnp.sum(y, axis=1, keepdims=True)          # (4*Cout, 1)
    ssq_ref[0] += jnp.sum(y * y, axis=1, keepdims=True)


def _conv_norm_kernel(x_ref, w_ref, scale_ref, shift_ref, o_ref):
    # x_ref: (1, Cin, T), w_ref: (4*Cout, Cin), scale/shift: (4*Cout, 1)
    # o_ref: (1, 4*Cout, T)  -- lane-dense last dim.
    y = _contract(w_ref[...], x_ref[0])                      # (4*Cout, T) f32
    o_ref[0] = (y * scale_ref[...] + shift_ref[...]).astype(o_ref.dtype)


# ---------------- wrapper ----------------

def transp_conv_block_2d(x_nchw, weight, bias, gamma, beta, eps=1e-5):
    """Forward of TranspConvBlock2D(ch_in, ch_out, order='b').

    x_nchw: (N, Cin, H, W) float32
    weight: (Cin, Cout, 2, 2)   (PyTorch ConvTranspose2d weight layout)
    bias:   (Cout,)             (unused: a per-channel bias is exactly cancelled by
                                 training-mode BatchNorm; kept for interface parity)
    gamma, beta: (Cout,)        (BatchNorm2d affine params)
    returns (N, Cout, 2H, 2W) float32
    """
    del bias  # mathematically a no-op under training-mode BN
    N, Cin, H, W = x_nchw.shape
    Cout = weight.shape[1]
    HW = H * W

    # spatial tile (lanes): multiple of 128, capped so tiles stay small in VMEM.
    T = min(8192, _round_up(HW, 128))
    HWp = _round_up(HW, T)
    J = HWp // T

    # NCHW is already channel-major per image: (N, Cin, H*W) is a pure reshape.
    x = x_nchw.reshape(N, Cin, HW).astype(jnp.float32)
    if HWp != HW:
        # zero pixels contribute exactly 0 to both sum and sum-of-squares (no bias).
        x = jnp.pad(x, ((0, 0), (0, 0), (0, HWp - HW)))

    # (Cin, Cout, 2, 2) -> (4*Cout, Cin), row order (c, kh, kw).
    w_cm = jnp.transpose(weight, (1, 2, 3, 0)).reshape(4 * Cout, Cin).astype(jnp.float32)

    # ---- pass 1: per-(n, row) sum / sum-of-squares (conv recomputed, never written) ----
    sums, ssqs = pl.pallas_call(
        _conv_stats_kernel,
        out_shape=(jax.ShapeDtypeStruct((N, 4 * Cout, 1), jnp.float32),
                   jax.ShapeDtypeStruct((N, 4 * Cout, 1), jnp.float32)),
        grid=(N, J),
        in_specs=[
            pl.BlockSpec((1, Cin, T), lambda n, j: (n, 0, j)),
            pl.BlockSpec((4 * Cout, Cin), lambda n, j: (0, 0)),
        ],
        out_specs=(
            pl.BlockSpec((1, 4 * Cout, 1), lambda n, j: (n, 0, 0)),
            pl.BlockSpec((1, 4 * Cout, 1), lambda n, j: (n, 0, 0)),
        ),
        compiler_params=pltpu.CompilerParams(
            dimension_semantics=("parallel", "arbitrary")),
    )(x, w_cm)

    # ---- fold BN into a per-row scale/shift (tiny XLA work) ----
    cnt = jnp.float32(N * 4 * HW)                 # N * (2H) * (2W) elements per channel
    ch_sum = sums.reshape(N, Cout, 4).sum(axis=(0, 2))
    ch_ssq = ssqs.reshape(N, Cout, 4).sum(axis=(0, 2))
    mean = ch_sum / cnt
    var = jnp.maximum(ch_ssq / cnt - mean * mean, 0.0)   # biased var (training-mode BN)
    inv = jax.lax.rsqrt(var + eps)
    scale_c = gamma.astype(jnp.float32) * inv
    shift_c = beta.astype(jnp.float32) - mean * scale_c
    scale_r = jnp.repeat(scale_c, 4)[:, None]            # (4*Cout, 1), row order (c,kh,kw)
    shift_r = jnp.repeat(shift_c, 4)[:, None]

    # ---- pass 2: recompute conv, apply scale/shift, lane-dense channel-major output ----
    y_cm = pl.pallas_call(
        _conv_norm_kernel,
        out_shape=jax.ShapeDtypeStruct((N, 4 * Cout, HWp), jnp.float32),
        grid=(N, J),
        in_specs=[
            pl.BlockSpec((1, Cin, T), lambda n, j: (n, 0, j)),
            pl.BlockSpec((4 * Cout, Cin), lambda n, j: (0, 0)),
            pl.BlockSpec((4 * Cout, 1), lambda n, j: (0, 0)),
            pl.BlockSpec((4 * Cout, 1), lambda n, j: (0, 0)),
        ],
        out_specs=pl.BlockSpec((1, 4 * Cout, T), lambda n, j: (n, 0, j)),
        compiler_params=pltpu.CompilerParams(
            dimension_semantics=("parallel", "parallel")),
    )(x, w_cm, scale_r, shift_r)

    # ---- scatter the 4 kernel positions into the 2x-upsampled NCHW grid (one XLA transpose) ----
    y_cm = y_cm[:, :, :HW]
    y6 = y_cm.reshape(N, Cout, 2, 2, H, W)                     # (n, c, kh, kw, h, w)
    out = jnp.transpose(y6, (0, 1, 4, 2, 5, 3)).reshape(N, Cout, 2 * H, 2 * W)
    return out


# ---------------- pure-JAX reference (for verification) ----------------

def ref_forward(x_nchw, weight, bias, gamma, beta, eps=1e-5):
    N, Cin, H, W = x_nchw.shape
    Cout = weight.shape[1]
    y = jnp.einsum("nchw,cokl->nohkwl", x_nchw, weight,
                   precision=jax.lax.Precision.HIGHEST)
    y = y.reshape(N, Cout, 2 * H, 2 * W) + bias[None, :, None, None]
    mean = y.mean(axis=(0, 2, 3), keepdims=True)
    var = ((y - mean) ** 2).mean(axis=(0, 2, 3), keepdims=True)
    return (y - mean) / jnp.sqrt(var + eps) * gamma[None, :, None, None] \
        + beta[None, :, None, None]


# ---------------- main ----------------

if __name__ == "__main__":
    key = jax.random.PRNGKey(0)
    k_x, k_w, k_b = jax.random.split(key, 3)

    N, ch_in, ch_out, H, W = 2, 4, 8, 16, 16

    x = jax.random.normal(k_x, (N, ch_in, H, W), dtype=jnp.float32)
    # ConvTranspose2d(ch_in, ch_out, kernel_size=2, stride=2) params (deterministic init)
    weight = jax.random.normal(k_w, (ch_in, ch_out, 2, 2), dtype=jnp.float32) * 0.1
    bias = jax.random.normal(k_b, (ch_out,), dtype=jnp.float32) * 0.1
    # BatchNorm2d affine params (PyTorch defaults: gamma=1, beta=0)
    gamma = jnp.ones((ch_out,), dtype=jnp.float32)
    beta = jnp.zeros((ch_out,), dtype=jnp.float32)

    out = transp_conv_block_2d(x, weight, bias, gamma, beta)
    out = jax.block_until_ready(out)

    ref = ref_forward(x, weight, bias, gamma, beta)
    assert out.shape == (N, ch_out, 2 * H, 2 * W), out.shape
    err = float(jnp.max(jnp.abs(out - ref)))
    assert jnp.allclose(out, ref, atol=1e-4, rtol=1e-4), err

    print("KERNEL_OK")
</pallas_src>

<mosaic_0001>
module attributes {stable_mosaic.version = 11 : i64} {
  func.func @_conv_stats_kernel(%arg0: i32, %arg1: i32, %arg2: memref<1x4x256xf32, #tpu.memory_space<vmem>>, %arg3: memref<32x4xf32, #tpu.memory_space<vmem>>, %arg4: memref<1x32x1xf32, #tpu.memory_space<vmem>>, %arg5: memref<1x32x1xf32, #tpu.memory_space<vmem>>) attributes {dimension_semantics = [#tpu.dimension_semantics<parallel>, #tpu.dimension_semantics<arbitrary>], iteration_bounds = array<i64: 2, 1>, scalar_prefetch = 0 : i64, scratch_operands = 0 : i64, tpu.core_type = #tpu.core_type<tc>, window_params = [{transform_indices = @transform_0, window_bounds = array<i64: 1, 4, 256>}, {pipeline_mode = #tpu.pipeline_mode<synchronous>, transform_indices = @transform_1, window_bounds = array<i64: 32, 4>}, {transform_indices = @transform_2, window_bounds = array<i64: 1, 32, 1>}, {transform_indices = @transform_3, window_bounds = array<i64: 1, 32, 1>}]} {
    %c0_i32 = arith.constant 0 : i32
    %0 = arith.cmpi eq, %arg1, %c0_i32 : i32
    %1 = arith.extui %0 : i1 to i32
    %c0_i32_0 = arith.constant 0 : i32
    %2 = arith.cmpi ne, %1, %c0_i32_0 : i32
    scf.if %2 {
      %cst_18 = arith.constant 0.000000e+00 : f32
      %46 = vector.broadcast %cst_18 : f32 to vector<1x32x1xf32>
      %c0_19 = arith.constant 0 : index
      %c0_20 = arith.constant 0 : index
      %c0_21 = arith.constant 0 : index
      %47 = vector.load %arg4[%c0_19, %c0_20, %c0_21] : memref<1x32x1xf32, #tpu.memory_space<vmem>>, vector<1x32x1xf32>
      tpu.vector_store %arg4[%c0_19, %c0_20, %c0_21], %46 {strides = array<i32>} : memref<1x32x1xf32, #tpu.memory_space<vmem>>, vector<1x32x1xf32>,
      %cst_22 = arith.constant 0.000000e+00 : f32
      %48 = vector.broadcast %cst_22 : f32 to vector<1x32x1xf32>
      %c0_23 = arith.constant 0 : index
      %c0_24 = arith.constant 0 : index
      %c0_25 = arith.constant 0 : index
      %49 = vector.load %arg5[%c0_23, %c0_24, %c0_25] : memref<1x32x1xf32, #tpu.memory_space<vmem>>, vector<1x32x1xf32>
      tpu.vector_store %arg5[%c0_23, %c0_24, %c0_25], %48 {strides = array<i32>} : memref<1x32x1xf32, #tpu.memory_space<vmem>>, vector<1x32x1xf32>,
    } else {
    }
    %c0 = arith.constant 0 : index
    %c0_1 = arith.constant 0 : index
    %3 = vector.load %arg3[%c0, %c0_1] : memref<32x4xf32, #tpu.memory_space<vmem>>, vector<32x4xf32>
    %c0_2 = arith.constant 0 : index
    %c0_3 = arith.constant 0 : index
    %c0_4 = arith.constant 0 : index
    %4 = vector.load %arg2[%c0_2, %c0_3, %c0_4] : memref<1x4x256xf32, #tpu.memory_space<vmem>>, vector<1x4x256xf32>
    %5 = vector.shape_cast %4 : vector<1x4x256xf32> to vector<4x256xf32>
    %6 = vector.extract_strided_slice %3 {offsets = [0, 0], sizes = [32, 1], strides = [1, 1]} : vector<32x4xf32> to vector<32x1xf32>
    %7 = vector.extract_strided_slice %5 {offsets = [0, 0], sizes = [1, 256], strides = [1, 1]} : vector<4x256xf32> to vector<1x256xf32>
    %8 = vector.broadcast %6 : vector<32x1xf32> to vector<32x256xf32>
    %9 = vector.broadcast %7 : vector<1x256xf32> to vector<32x256xf32>
    %10 = arith.mulf %8, %9 : vector<32x256xf32>
    %11 = vector.extract_strided_slice %3 {offsets = [0, 1], sizes = [32, 1], strides = [1, 1]} : vector<32x4xf32> to vector<32x1xf32>
    %12 = vector.extract_strided_slice %5 {offsets = [1, 0], sizes = [1, 256], strides = [1, 1]} : vector<4x256xf32> to vector<1x256xf32>
    %13 = vector.broadcast %11 : vector<32x1xf32> to vector<32x256xf32>
    %14 = vector.broadcast %12 : vector<1x256xf32> to vector<32x256xf32>
    %15 = arith.mulf %13, %14 : vector<32x256xf32>
    %16 = arith.addf %10, %15 : vector<32x256xf32>
    %17 = vector.extract_strided_slice %3 {offsets = [0, 2], sizes = [32, 1], strides = [1, 1]} : vector<32x4xf32> to vector<32x1xf32>
    %18 = vector.extract_strided_slice %5 {offsets = [2, 0], sizes = [1, 256], strides = [1, 1]} : vector<4x256xf32> to vector<1x256xf32>
    %19 = vector.broadcast %17 : vector<32x1xf32> to vector<32x256xf32>
    %20 = vector.broadcast %18 : vector<1x256xf32> to vector<32x256xf32>
    %21 = arith.mulf %19, %20 : vector<32x256xf32>
    %22 = arith.addf %16, %21 : vector<32x256xf32>
    %23 = vector.extract_strided_slice %3 {offsets = [0, 3], sizes = [32, 1], strides = [1, 1]} : vector<32x4xf32> to vector<32x1xf32>
    %24 = vector.extract_strided_slice %5 {offsets = [3, 0], sizes = [1, 256], strides = [1, 1]} : vector<4x256xf32> to vector<1x256xf32>
    %25 = vector.broadcast %23 : vector<32x1xf32> to vector<32x256xf32>
    %26 = vector.broadcast %24 : vector<1x256xf32> to vector<32x256xf32>
    %27 = arith.mulf %25, %26 : vector<32x256xf32>
    %28 = arith.addf %22, %27 : vector<32x256xf32>
    %c0_5 = arith.constant 0 : index
    %c0_6 = arith.constant 0 : index
    %c0_7 = arith.constant 0 : index
    %29 = vector.load %arg4[%c0_5, %c0_6, %c0_7] : memref<1x32x1xf32, #tpu.memory_space<vmem>>, vector<1x32x1xf32>
    %30 = vector.shape_cast %29 : vector<1x32x1xf32> to vector<32x1xf32>
    %cst = arith.constant dense<0.000000e+00> : vector<32xf32>
    %31 = vector.multi_reduction <add>, %28, %cst [1] : vector<32x256xf32> to vector<32xf32>
    %32 = vector.shape_cast %31 : vector<32xf32> to vector<32x1xf32>
    %33 = arith.addf %30, %32 : vector<32x1xf32>
    %c0_8 = arith.constant 0 : index
    %c0_9 = arith.constant 0 : index
    %c0_10 = arith.constant 0 : index
    %34 = vector.load %arg4[%c0_8, %c0_9, %c0_10] : memref<1x32x1xf32, #tpu.memory_space<vmem>>, vector<1x32x1xf32>
    %35 = vector.shape_cast %34 : vector<1x32x1xf32> to vector<32x1xf32>
    %36 = vector.shape_cast %33 : vector<32x1xf32> to vector<1x32x1xf32>
    tpu.vector_store %arg4[%c0_8, %c0_9, %c0_10], %36 {strides = array<i32>} : memref<1x32x1xf32, #tpu.memory_space<vmem>>, vector<1x32x1xf32>,
    %c0_11 = arith.constant 0 : index
    %c0_12 = arith.constant 0 : index
    %c0_13 = arith.constant 0 : index
    %37 = vector.load %arg5[%c0_11, %c0_12, %c0_13] : memref<1x32x1xf32, #tpu.memory_space<vmem>>, vector<1x32x1xf32>
    %38 = vector.shape_cast %37 : vector<1x32x1xf32> to vector<32x1xf32>
    %39 = arith.mulf %28, %28 : vector<32x256xf32>
    %cst_14 = arith.constant dense<0.000000e+00> : vector<32xf32>
    %40 = vector.multi_reduction <add>, %39, %cst_14 [1] : vector<32x256xf32> to vector<32xf32>
    %41 = vector.shape_cast %40 : vector<32xf32> to vector<32x1xf32>
    %42 = arith.addf %38, %41 : vector<32x1xf32>
    %c0_15 = arith.constant 0 : index
    %c0_16 = arith.constant 0 : index
    %c0_17 = arith.constant 0 : index
    %43 = vector.load %arg5[%c0_15, %c0_16, %c0_17] : memref<1x32x1xf32, #tpu.memory_space<vmem>>, vector<1x32x1xf32>
    %44 = vector.shape_cast %43 : vector<1x32x1xf32> to vector<32x1xf32>
    %45 = vector.shape_cast %42 : vector<32x1xf32> to vector<1x32x1xf32>
    tpu.vector_store %arg5[%c0_15, %c0_16, %c0_17], %45 {strides = array<i32>} : memref<1x32x1xf32, #tpu.memory_space<vmem>>, vector<1x32x1xf32>,
    return
  }
  func.func @transform_0(%arg0: i32, %arg1: i32) -> (i32, i32, i32) {
    %c0_i32 = arith.constant 0 : i32
    %c0_i32_0 = arith.constant 0 : i32
    return %arg0, %c0_i32, %arg1 : i32, i32, i32
  }
  func.func @transform_1(%arg0: i32, %arg1: i32) -> (i32, i32) {
    %c0_i32 = arith.constant 0 : i32
    %c0_i32_0 = arith.constant 0 : i32
    %c0_i32_1 = arith.constant 0 : i32
    return %c0_i32, %c0_i32_0 : i32, i32
  }
  func.func @transform_2(%arg0: i32, %arg1: i32) -> (i32, i32, i32) {
    %c0_i32 = arith.constant 0 : i32
    %c0_i32_0 = arith.constant 0 : i32
    %c0_i32_1 = arith.constant 0 : i32
    return %arg0, %c0_i32, %c0_i32_0 : i32, i32, i32
  }
  func.func @transform_3(%arg0: i32, %arg1: i32) -> (i32, i32, i32) {
    %c0_i32 = arith.constant 0 : i32
    %c0_i32_0 = arith.constant 0 : i32
    %c0_i32_1 = arith.constant 0 : i32
    return %arg0, %c0_i32, %c0_i32_0 : i32, i32, i32
  }
}

</mosaic_0001>

<bundles_post_ra>
// kernel: tpu_custom_call.1
= control target key start
LH: loop header
LB: loop body
LE: loop exit
PB: predicated region body
PF: predicated region fallthrough
CT: control target
= control target key end

     0   :  { %s688_s12 = smov 0   ;;  %s690_s13 = smov 0   ;;  %s788_s0 = inlined_call_operand.vmem [shape: f32[2,4,256], index: 0, kind: input, shape index: {}]   ;;  %s789_s1 = inlined_call_operand.vmem [shape: f32[32,4], index: 1, kind: input, shape index: {}]   ;;  %s790_s2 = inlined_call_operand.vmem [shape: f32[2,32,1], index: 2, kind: output, shape index: {0}]   ;;  %s791_s3 = inlined_call_operand.vmem [shape: f32[2,32,1], index: 3, kind: output, shape index: {1}]  }
   0x1   :  { %s692_s14 = smov 0  }
   0x2 LB: > { %s26_s15 = sadd.s32 1, %s657_s13  ;;  %p590_p0 = scmp.ge.s32.totalorder %s661_s14, 1  ;;  %s661_s14 = sphi %s692_s14, %s14_s14   ;;  %s657_s13 = sphi %s690_s13, %s793_s13   ;;  %s653_s12 = sphi %s688_s12, %s792_s12  }
   0x3   : > { %p28_p1 = scmp.ge.s32.totalorder %s26_s15, 2  ;;  %p159_p2 = scmp.lt.s32.totalorder %s661_s14, 3 }
   0x5   : > { %s795_s15 = smov (%p28_p1, %s26_s15), 0  ;;  %p160_p3 = pnand %p590_p0, %p159_p2 }
   0x6   : > { %p193_p4 = scmp.lt.s32.totalorder (!%p160_p3), %s653_s12, 1 }
   0x7   : > { %163 = sbr.rel (%p160_p3) target bundleno = 328 (0x148), region = 28 }
   0xc   : > { %v227_v0 = vld [vmem:[%s789_s1 + $0x10] sm:$0xff]  ;;  %v225_v1 = vld [vmem:[%s789_s1] sm:$0xff]  ;;  %v663_v2 = vmov 0   ;;  %v228_v3 = vld [vmem:[%s789_s1 + $0x18] sm:$0xff]  ;;  %v664_v5 = vmov 1   ;;  %v665_v6 = vmov 2   ;;  %v251_v9 = vlaneseq }
   0xd   : > { %632 = vset.pattern.permute.xlu1 %v663_v2  ;;  %631 = vset.pattern.permute.xlu0 %v663_v2  ;;  %v226_v4 = vld [vmem:[%s789_s1 + $0x8] sm:$0xff]  ;;  %v666_v7 = vmov 3   ;;  %s797_s12 = smov (!%p193_p4, %s653_s12), 1  ;;  %vm216_vm0 = vcmask 7168   ;;  %v667_v8 = vmov 0.0  }
   0xe   : > { %242 = vperm.xlu1 %632, %v227_v0   ;;  %232 = vperm.xlu0 %631, %v225_v1   ;;  %s600_s24 = sshll.u32 %s797_s12, 5  ;;  %s599_s4 = sshll.u32 %s797_s12, 3  ;;  %v252_v12 = vshrl.u32 %v251_v9, 7 }
   0xf   : > { %s725_s27 = scalar_lea.vmem %s790_s2, %s600_s24  ;;  %s730_s30 = scalar_lea.vmem %s791_s3, %s600_s24 }
  0x10   : > { %217 = vst.msk [vmem:[%s725_s27] sm:$0xff] %vm216_vm0, %v667_v8  ;;  %218 = vst.msk [vmem:[%s725_s27 + $0x8] sm:$0xff] %vm216_vm0, %v667_v8  ;;  %s200_s7 = scalar_lea.vmem %s788_s0, %s599_s4  ;;  %v295_v15 = vsub.s32 1, %v252_v12  ;;  %v299_v16 = vsub.s32 5, %v252_v12  ;;  %v253_v17 = vsub.s32 0, %v252_v12  ;;  %v257_v18 = vsub.s32 4, %v252_v12 }
  0x11   : > { %219 = vst.msk [vmem:[%s725_s27 + $0x10] sm:$0xff] %vm216_vm0, %v667_v8  ;;  %220 = vst.msk [vmem:[%s725_s27 + $0x18] sm:$0xff] %vm216_vm0, %v667_v8  ;;  %v229_v19 = vld [vmem:[%s200_s7] sm:$0xff]  ;;  %v345_v20 = vsub.s32 2, %v252_v12  ;;  %v349_v21 = vsub.s32 6, %v252_v12  ;;  %v395_v30 = vsub.s32 3, %v252_v12 }
  0x12   : > { %247 = vperm.xlu1 %632, %v228_v3   ;;  %237 = vperm.xlu0 %631, %v226_v4   ;;  %221 = vst.msk [vmem:[%s730_s30] sm:$0xff] %vm216_vm0, %v667_v8  ;;  %222 = vst.msk [vmem:[%s730_s30 + $0x8] sm:$0xff] %vm216_vm0, %v667_v8  ;;  %v296_v24 = vrot.slane %v229_v19, %v295_v15  ;;  %v300_v25 = vrot.slane %v229_v19, %v299_v16  ;;  %v399_v31 = vsub.s32 7, %v252_v12 }
  0x13   : > { %223 = vst.msk [vmem:[%s730_s30 + $0x10] sm:$0xff] %vm216_vm0, %v667_v8  ;;  %224 = vst.msk [vmem:[%s730_s30 + $0x18] sm:$0xff] %vm216_vm0, %v667_v8  ;;  %v254_v26 = vrot.slane %v229_v19, %v253_v17  ;;  %v258_v27 = vrot.slane %v229_v19, %v257_v18  ;;  %v346_v28 = vrot.slane %v229_v19, %v345_v20 }
  0x14   : > { %v350_v29 = vrot.slane %v229_v19, %v349_v21  ;;  %v306_v34 = vrot.slane %v296_v24, %v295_v15  ;;  %v310_v35 = vrot.slane %v300_v25, %v295_v15  ;;  %v396_v40 = vrot.slane %v229_v19, %v395_v30 }
  0x15   : > { %v264_v36 = vrot.slane %v254_v26, %v253_v17  ;;  %v268_v37 = vrot.slane %v258_v27, %v253_v17  ;;  %v356_v38 = vrot.slane %v346_v28, %v345_v20  ;;  %v400_v41 = vrot.slane %v229_v19, %v399_v31 }
  0x16   : > { %634 = vset.pattern.permute.xlu1 %v664_v5  ;;  %633 = vset.pattern.permute.xlu0 %v664_v5  ;;  %v360_v39 = vrot.slane %v350_v29, %v345_v20  ;;  %v406_v50 = vrot.slane %v396_v40, %v395_v30 }
  0x17   : > { %282 = vperm.xlu1 %634, %v226_v4   ;;  %278 = vperm.xlu0 %633, %v225_v1   ;;  %v410_v51 = vrot.slane %v400_v41, %v395_v30 }
  0x1b   : > { %286 = vperm.xlu1 %634, %v227_v0   ;;  %290 = vperm.xlu0 %633, %v228_v3  }
  0x1f   : > { %635 = vset.pattern.permute.xlu1 %v665_v6  ;;  %636 = vset.pattern.permute.xlu0 %v665_v6 }
  0x20   : > { %328 = vperm.xlu1 %635, %v225_v1   ;;  %332 = vperm.xlu0 %636, %v226_v4  }
  0x24   : > { %336 = vperm.xlu1 %635, %v227_v0   ;;  %637 = vset.pattern.permute.xlu0 %v666_v7 }
  0x25   : > { %378 = vperm.xlu0 %637, %v225_v1  }
  0x28   : > { %340 = vperm.xlu1 %635, %v228_v3  }
  0x29   : > { %390 = vperm.xlu0 %637, %v228_v3  }
  0x2c   : > { %638 = vset.pattern.permute.xlu1 %v666_v7 }
  0x2d   : > { %382 = vperm.xlu1 %638, %v226_v4  }
  0x31   : > { %386 = vperm.xlu1 %638, %v227_v0  }
  0x89   : > { %v748_v10 = vpop.permute.xlu1 %242  ;;  %v233_v11 = vpop.permute.xlu0 %232 }
  0x8a   : > { %v269_v42 = vmul.f32 %v264_v36, %v233_v11  ;;  %v270_v43 = vmul.f32 %v268_v37, %v233_v11 }
  0x8d   : > { %v248_v13 = vpop.permute.xlu1 %247  ;;  %v238_v14 = vpop.permute.xlu0 %237 }
  0x8e   : > { %v275_v56 = vmul.f32 %v264_v36, %v248_v13  ;;  %v276_v63 = vmul.f32 %v268_v37, %v248_v13  ;;  %v271_v0 = vmul.f32 %v264_v36, %v238_v14  ;;  %v272_v1 = vmul.f32 %v268_v37, %v238_v14 }
  0x8f   : > { %v273_v14 = vmul.f32 %v264_v36, %v748_v10 }
  0x92   : > { %v283_v22 = vpop.permute.xlu1 %282  ;;  %v279_v23 = vpop.permute.xlu0 %278 }
  0x93   : > { %v311_v44 = vmul.f32 %v306_v34, %v279_v23  ;;  %v312_v45 = vmul.f32 %v310_v35, %v279_v23  ;;  %v313_v2 = vmul.f32 %v306_v34, %v283_v22  ;;  %v314_v3 = vmul.f32 %v310_v35, %v283_v22 }
  0x94   : > { %v274_v22 = vmul.f32 %v268_v37, %v748_v10 }
  0x95   : > { %v319_v52 = vadd.f32 %v311_v44, %v269_v42  ;;  %v320_v53 = vadd.f32 %v312_v45, %v270_v43  ;;  %v321_v24 = vadd.f32 %v313_v2, %v271_v0  ;;  %v322_v25 = vadd.f32 %v314_v3, %v272_v1  ;;  %v428_v2 = vld [vmem:[%s725_s27 + $0x8] sm:$0xff] }
  0x96   : > { %v287_v32 = vpop.permute.xlu1 %286  ;;  %v291_v33 = vpop.permute.xlu0 %290 }
  0x97   : > { %v317_v54 = vmul.f32 %v306_v34, %v291_v33  ;;  %v318_v57 = vmul.f32 %v310_v35, %v291_v33  ;;  %v315_v20 = vmul.f32 %v306_v34, %v287_v32  ;;  %v316_v21 = vmul.f32 %v310_v35, %v287_v32 }
  0x99   : > { %v325_v4 = vadd.f32 %v317_v54, %v275_v56  ;;  %v326_v8 = vadd.f32 %v318_v57, %v276_v63  ;;  %v323_v34 = vadd.f32 %v315_v20, %v273_v14  ;;  %v324_v32 = vadd.f32 %v316_v21, %v274_v22  ;;  %v430_v63 = vld [vmem:[%s725_s27 + $0x18] sm:$0xff]  ;;  %v454_v20 = vld [vmem:[%s730_s30 + $0x10] sm:$0xff] }
  0x9b   : > { %v329_v46 = vpop.permute.xlu1 %328  ;;  %v333_v47 = vpop.permute.xlu0 %332 }
  0x9c   : > { %v361_v48 = vmul.f32 %v356_v38, %v329_v46  ;;  %v362_v49 = vmul.f32 %v360_v39, %v329_v46  ;;  %v363_v9 = vmul.f32 %v356_v38, %v333_v47  ;;  %v364_v16 = vmul.f32 %v360_v39, %v333_v47 }
  0x9e   : > { %v369_v59 = vadd.f32 %v361_v48, %v319_v52  ;;  %v370_v60 = vadd.f32 %v362_v49, %v320_v53  ;;  %v371_v31 = vadd.f32 %v363_v9, %v321_v24  ;;  %v372_v33 = vadd.f32 %v364_v16, %v322_v25 }
  0x9f   : > { %v337_v55 = vpop.permute.xlu1 %336 }
  0xa0   : > { %v379_v58 = vpop.permute.xlu0 %378  ;;  %v365_v26 = vmul.f32 %v356_v38, %v337_v55  ;;  %v366_v27 = vmul.f32 %v360_v39, %v337_v55 }
  0xa1   : > { %v411_v61 = vmul.f32 %v406_v50, %v379_v58  ;;  %v412_v62 = vmul.f32 %v410_v51, %v379_v58 }
  0xa2   : > { %v373_v36 = vadd.f32 %v365_v26, %v323_v34  ;;  %v374_v44 = vadd.f32 %v366_v27, %v324_v32 }
  0xa3   : > { %v341_v5 = vpop.permute.xlu1 %340  ;;  %v419_v6 = vadd.f32 %v411_v61, %v369_v59  ;;  %v420_v7 = vadd.f32 %v412_v62, %v370_v60  ;;  %v427_v60 = vld [vmem:[%s725_s27] sm:$0xff] }
  0xa4   : > { %v367_v11 = vmul.f32 %v356_v38, %v341_v5  ;;  %v368_v12 = vmul.f32 %v360_v39, %v341_v5  ;;  %v391_v15 = vpop.permute.xlu0 %390  ;;  %v453_v5 = vld [vmem:[%s730_s30 + $0x8] sm:$0xff] }
  0xa5   : > { %v417_v17 = vmul.f32 %v406_v50, %v391_v15  ;;  %v418_v18 = vmul.f32 %v410_v51, %v391_v15  ;;  %v431_v19 = vadd.f32 %v420_v7, %v419_v6  ;;  %v456_v55 = vmul.f32 %v419_v6, %v419_v6  ;;  %v429_v6 = vld [vmem:[%s725_s27 + $0x10] sm:$0xff]  ;;  %v452_v15 = vld [vmem:[%s730_s30] sm:$0xff] }
  0xa6   : > { %v375_v13 = vadd.f32 %v367_v11, %v325_v4  ;;  %v376_v23 = vadd.f32 %v368_v12, %v326_v8  ;;  %v457_v56 = vmul.f32 %v420_v7, %v420_v7  ;;  %v455_v12 = vld [vmem:[%s730_s30 + $0x18] sm:$0xff] }
  0xa7   : > { %432 = vadd.xlane.f32.xlu1 %v431_v19 }
  0xa8   : > { %v383_v28 = vpop.permute.xlu1 %382  ;;  %v425_v29 = vadd.f32 %v417_v17, %v375_v13  ;;  %v426_v30 = vadd.f32 %v418_v18, %v376_v23 }
  0xa9   : > { %v413_v40 = vmul.f32 %v406_v50, %v383_v28  ;;  %v414_v41 = vmul.f32 %v410_v51, %v383_v28 }
  0xaa   : > { %v440_v35 = vadd.f32 %v426_v30, %v425_v29  ;;  %v462_v52 = vmul.f32 %v425_v29, %v425_v29  ;;  %v463_v53 = vmul.f32 %v426_v30, %v426_v30 }
  0xab   : > { %v421_v42 = vadd.f32 %v413_v40, %v371_v31  ;;  %v422_v43 = vadd.f32 %v414_v41, %v372_v33 }
  0xac   : > { %v387_v10 = vpop.permute.xlu1 %386  ;;  %441 = vadd.xlane.f32.xlu1 %v440_v35 }
  0xad   : > { %v415_v37 = vmul.f32 %v406_v50, %v387_v10  ;;  %v416_v45 = vmul.f32 %v410_v51, %v387_v10  ;;  %v434_v38 = vadd.f32 %v422_v43, %v421_v42  ;;  %v458_v39 = vmul.f32 %v421_v42, %v421_v42 }
  0xae   : > { %v459_v46 = vmul.f32 %v422_v43, %v422_v43  ;;  %v473_v50 = vadd.f32 %v463_v53, %v462_v52  ;;  %v464_v51 = vadd.f32 %v457_v56, %v456_v55 }
  0xaf   : > { %435 = vadd.xlane.f32.xlu0 %v434_v38  ;;  %v423_v47 = vadd.f32 %v415_v37, %v373_v36  ;;  %v424_v48 = vadd.f32 %v416_v45, %v374_v44 }
  0xb0   : > { %v467_v49 = vadd.f32 %v459_v46, %v458_v39 }
  0xb1   : > { %v437_v54 = vadd.f32 %v424_v48, %v423_v47  ;;  %v460_v57 = vmul.f32 %v423_v47, %v423_v47  ;;  %v461_v58 = vmul.f32 %v424_v48, %v424_v48 }
  0xb2   : > { %468 = vadd.xlane.f32.xlu1 %v467_v49 }
  0xb3   : > { %438 = vadd.xlane.f32.xlu0 %v437_v54  ;;  %v470_v59 = vadd.f32 %v461_v58, %v460_v57 }
  0xb6   : > { %474 = vadd.xlane.f32.xlu1 %v473_v50 }
  0xb7   : > { %465 = vadd.xlane.f32.xlu0 %v464_v51 }
  0xbb   : > { %471 = vadd.xlane.f32.xlu0 %v470_v59 }
 0x130   : > { %v433_v61 = vpop.xlane.xlu1 %432 }
 0x131   : > { %v443_v62 = vadd.f32 %v433_v61, %v427_v60 }
 0x133   : > { %448 = vst.msk [vmem:[%s725_s27] sm:$0xff] %vm216_vm0, %v443_v62 }
 0x135   : > { %v442_v0 = vpop.xlane.xlu1 %441 }
 0x136   : > { %v446_v1 = vadd.f32 %v442_v0, %v430_v63 }
 0x138   : > { %451 = vst.msk [vmem:[%s725_s27 + $0x18] sm:$0xff] %vm216_vm0, %v446_v1  ;;  %v436_v3 = vpop.xlane.xlu0 %435 }
 0x139   : > { %v444_v4 = vadd.f32 %v436_v3, %v428_v2 }
 0x13b   : > { %449 = vst.msk [vmem:[%s725_s27 + $0x8] sm:$0xff] %vm216_vm0, %v444_v4  ;;  %v469_v7 = vpop.xlane.xlu1 %468 }
 0x13c   : > { %v477_v8 = vadd.f32 %v469_v7, %v453_v5  ;;  %v439_v9 = vpop.xlane.xlu0 %438 }
 0x13d   : > { %v445_v11 = vadd.f32 %v439_v9, %v429_v6 }
 0x13e   : > { %481 = vst.msk [vmem:[%s730_s30 + $0x8] sm:$0xff] %vm216_vm0, %v477_v8 }
 0x13f   : > { %450 = vst.msk [vmem:[%s725_s27 + $0x10] sm:$0xff] %vm216_vm0, %v445_v11  ;;  %v475_v16 = vpop.xlane.xlu1 %474 }
 0x140   : > { %v479_v17 = vadd.f32 %v475_v16, %v455_v12  ;;  %v466_v18 = vpop.xlane.xlu0 %465 }
 0x141   : > { %v476_v19 = vadd.f32 %v466_v18, %v452_v15 }
 0x142   : > { %483 = vst.msk [vmem:[%s730_s30 + $0x18] sm:$0xff] %vm216_vm0, %v479_v17 }
 0x143   : > { %480 = vst.msk [vmem:[%s730_s30] sm:$0xff] %vm216_vm0, %v476_v19 }
 0x144   : > { %v472_v21 = vpop.xlane.xlu0 %471 }
 0x145   : > { %v478_v13 = vadd.f32 %v472_v21, %v454_v20 }
 0x147   : > { %482 = vst.msk [vmem:[%s730_s30 + $0x10] sm:$0xff] %vm216_vm0, %v478_v13 }
 0x148 PF: > { %s14_s14 = sadd.s32 1, %s661_s14   ;;  %s792_s12 = smov %s657_s13 }
 0x149   : > { %p11_p5 = scmp.ge.s32.totalorder %s14_s14, 4   ;;  %s793_s13 = smov %s795_s15 }
 0x14b   :  { %13 = sbr.rel (!%p11_p5) target bundleno = 2 (0x2), region = 74 }

</bundles_post_ra>
